<compile_context>
chip_gen: v5e
topology: v5e:2x2
jax: 0.10.0
libtpu: 0.0.40
codegen_flags: <defaults>
</compile_context>

<pallas_src>
import functools

import jax
import jax.numpy as jnp
from jax.experimental import pallas as pl
from jax.experimental.pallas import tpu as pltpu

_BIG = 1e30  # sentinel "infinite" squared distance (sqrt stays finite in f32)


def _round_up(a, b):
    return (a + b - 1) // b * b


def _pick_block_n(n, d_pad, k_pad):
    """Largest power-of-two row tile whose double-buffered x/sim blocks plus
    the resident prototype tile stay well under the default scoped-VMEM limit."""
    budget = 16 * 1024 * 1024
    resident = 4 * (k_pad * d_pad + 2 * k_pad)
    tn = 1024
    while tn > 8 and (tn > _round_up(n, 8)
                      or 8 * tn * (d_pad + k_pad) + resident > budget):
        tn //= 2
    return tn


def _prototypes_kernel(x_ref, p_ref, pn_ref, sim_ref, dloss_ref, closs_ref,
                       eloss_ref, cmin_ref, *, n_rows, n_protos, dmin):
    """One row-tile of the Prototypes forward pass.

    x_ref:   (TN, Dp)   input rows (zero padded in D / trailing rows)
    p_ref:   (Kp, Dp)   prototypes (zero padded rows/cols), VMEM resident
    pn_ref:  (1,  Kp)   ||p_k||^2 per prototype (f32)
    sim_ref: (TN, Kp)   exp(-||x_n - p_k||)     (lane-dense output tile)
    dloss/closs/eloss_ref: (1, 1) scalar outputs (resident accumulators)
    cmin_ref: (1, Kp)   VMEM scratch: running min_n d[n, k]
    """
    i = pl.program_id(0)
    block_n, k_pad = sim_ref.shape

    p32 = p_ref[...].astype(jnp.float32)            # (Kp, Dp)
    pn_row = pn_ref[...]                            # (1, Kp)

    # ---- first tile: init accumulators + fused diversity regularizer -------
    @pl.when(i == 0)
    def _init():
        cmin_ref[...] = jnp.full(cmin_ref.shape, _BIG, jnp.float32)
        eloss_ref[...] = jnp.zeros(eloss_ref.shape, jnp.float32)
        # Gram-matrix form of cdist(p, p) on the MXU.
        gram = jax.lax.dot_general(
            p_ref[...], p_ref[...], (((1,), (1,)), ((), ())),
            preferred_element_type=jnp.float32)      # (Kp, Kp)
        pn_col = jnp.sum(p32 * p32, axis=1, keepdims=True)   # (Kp, 1)
        pd2 = jnp.maximum(pn_col + pn_row - 2.0 * gram, 0.0)
        pdist = jnp.sqrt(pd2)
        rd = jnp.maximum(dmin - pdist, 0.0)
        r = jax.lax.broadcasted_iota(jnp.int32, (k_pad, k_pad), 0)
        c = jax.lax.broadcasted_iota(jnp.int32, (k_pad, k_pad), 1)
        mask = ((r != c) & (r < n_protos) & (c < n_protos)).astype(jnp.float32)
        sq = (rd * mask) ** 2
        dloss_ref[...] = 0.5 * jnp.sum(
            jnp.sum(sq, axis=1, keepdims=True), axis=0, keepdims=True)

    # ---- pairwise distances via the MXU -------------------------------------
    x32 = x_ref[...].astype(jnp.float32)            # (TN, Dp)
    xp = jax.lax.dot_general(
        x_ref[...], p_ref[...], (((1,), (1,)), ((), ())),
        preferred_element_type=jnp.float32)          # (TN, Kp) = x . p^T
    xx = jnp.sum(x32 * x32, axis=1, keepdims=True)   # (TN, 1)
    d2 = jnp.maximum(xx + pn_row - 2.0 * xp, 0.0)    # clamp rounding negatives
    col = jax.lax.broadcasted_iota(jnp.int32, (block_n, k_pad), 1)
    d2 = jnp.where(col < n_protos, d2, _BIG)         # mask padded prototypes
    d = jnp.sqrt(d2)                                 # (TN, Kp)
    sim_ref[...] = jnp.exp(-d).astype(sim_ref.dtype)  # padded cols -> exp(-1e15)=0

    # ---- running reductions for cLoss / eLoss --------------------------------
    row_ids = i * block_n + jax.lax.broadcasted_iota(
        jnp.int32, (block_n, k_pad), 0)
    rows_ok = row_ids < n_rows                       # mask padded batch rows

    # cLoss: per-prototype running min over the batch.
    d_c = jnp.where(rows_ok, d, _BIG)
    cmin_ref[...] = jnp.minimum(cmin_ref[...],
                                jnp.min(d_c, axis=0, keepdims=True))

    # eLoss: running sum of per-sample min over prototypes
    # (padded rows are forced to 0 so their row-min contributes nothing).
    d_e = jnp.where(rows_ok, d, 0.0)
    eloss_ref[...] += jnp.sum(jnp.min(d_e, axis=1, keepdims=True),
                              axis=0, keepdims=True)

    # ---- last tile: finalize cLoss -------------------------------------------
    @pl.when(i == pl.num_programs(0) - 1)
    def _fin():
        kcol = jax.lax.broadcasted_iota(jnp.int32, cmin_ref.shape, 1)
        cm = jnp.where(kcol < n_protos, cmin_ref[...], 0.0)
        closs_ref[...] = jnp.sum(cm, axis=1, keepdims=True)


def prototypes_forward(x, prototypes, *, dmin=1.0, training=False, block_n=None):
    """JAX/Pallas equivalent of Prototypes.forward.

    x:          (N, D) array (f32 or bf16)
    prototypes: (1, K, D) parameter (as in the torch module) or (K, D)
    Returns (exp(-d), (dLoss, cLoss, eLoss)); eval mode returns zero losses.
    """
    p = prototypes[0] if prototypes.ndim == 3 else prototypes
    K, D = p.shape
    N = x.shape[0]

    k_pad = _round_up(K, 128)        # lane-dense sim stores + MXU-friendly
    d_pad = _round_up(D, 128)        # full-lane x / p tiles
    if block_n is None:
        tn = _pick_block_n(N, d_pad, k_pad)
    else:
        tn = max(8, _round_up(min(block_n, _round_up(N, 8)), 8))
    n_pad = _round_up(N, tn)
    n_tiles = n_pad // tn

    # Zero-pad once (zeros don't change L2 distances; padded rows / prototype
    # columns are masked inside the kernel).  Input dtypes are preserved — any
    # widening happens in-kernel / on the MXU accumulate path.
    x_in = x
    if (n_pad, d_pad) != (N, D):
        x_in = jnp.zeros((n_pad, d_pad), x.dtype).at[:N, :D].set(x)
    p_in = p
    if (k_pad, d_pad) != (K, D):
        p_in = jnp.zeros((k_pad, d_pad), p.dtype).at[:K, :D].set(p)
    # ||p_k||^2 as a (1, Kp) lane-row (tiny K*D reduce; avoids a sublane->lane
    # relayout inside the kernel).
    pn_row = jnp.sum(p_in.astype(jnp.float32) ** 2, axis=1)[None, :]

    kernel = functools.partial(_prototypes_kernel, n_rows=N, n_protos=K,
                               dmin=float(dmin))

    sim, dloss, closs, eloss = pl.pallas_call(
        kernel,
        grid_spec=pltpu.PrefetchScalarGridSpec(
            num_scalar_prefetch=0,
            grid=(n_tiles,),
            in_specs=[
                pl.BlockSpec((tn, d_pad), lambda i: (i, 0)),     # x row tile
                pl.BlockSpec((k_pad, d_pad), lambda i: (0, 0)),  # prototypes
                pl.BlockSpec((1, k_pad), lambda i: (0, 0)),      # ||p||^2
            ],
            out_specs=(
                pl.BlockSpec((tn, k_pad), lambda i: (i, 0)),     # sim tile
                pl.BlockSpec((1, 1), lambda i: (0, 0)),          # dLoss
                pl.BlockSpec((1, 1), lambda i: (0, 0)),          # cLoss
                pl.BlockSpec((1, 1), lambda i: (0, 0)),          # eLoss
            ),
            scratch_shapes=[pltpu.VMEM((1, k_pad), jnp.float32)],  # running min
        ),
        out_shape=(
            jax.ShapeDtypeStruct((n_pad, k_pad), jnp.float32),
            jax.ShapeDtypeStruct((1, 1), jnp.float32),
            jax.ShapeDtypeStruct((1, 1), jnp.float32),
            jax.ShapeDtypeStruct((1, 1), jnp.float32),
        ),
        # The single grid axis carries running accumulators -> "arbitrary".
        # (For v7x dual-TC: add a leading "parallel" axis splitting N and
        #  combine per-half cLoss/eLoss partials in the wrapper.)
        compiler_params=pltpu.CompilerParams(
            dimension_semantics=("arbitrary",)),
    )(x_in, p_in, pn_row)

    sim = sim[:N, :K]
    if training:
        return sim, (dloss[0, 0], closs[0, 0], eloss[0, 0])
    zero = jnp.float32(0.0)
    return sim, (zero, zero, zero)


def _reference(x, prototypes, dmin):
    """Pure-JAX reference mirroring the torch module."""
    p = prototypes[0]
    d = jnp.sqrt(jnp.sum((x[:, None, :] - p[None, :, :]) ** 2, axis=-1))
    sim = jnp.exp(-d)
    dist = jnp.sqrt(jnp.sum((p[:, None, :] - p[None, :, :]) ** 2, axis=-1))
    rd = jnp.maximum(dmin - dist, 0.0) * (1.0 - jnp.eye(p.shape[0]))
    dloss = jnp.sum(rd ** 2) / 2.0
    closs = jnp.sum(jnp.min(d, axis=0))
    eloss = jnp.sum(jnp.min(d, axis=1))
    return sim, dloss, closs, eloss


if __name__ == "__main__":
    key = jax.random.PRNGKey(0)
    kx, kp, kx2 = jax.random.split(key, 3)

    # Small shapes consistent with the module: batch N=8, K=4 prototypes, D=32.
    N, K, D = 8, 4, 32
    # Deterministic kaiming_uniform_-style init for the (1, K, D) parameter.
    bound = (6.0 / (K * D)) ** 0.5
    prototypes = jax.random.uniform(kp, (1, K, D), jnp.float32, -bound, bound)
    x = jax.random.normal(kx, (N, D), dtype=jnp.float32)

    sim, (dl, cl, el) = prototypes_forward(x, prototypes, dmin=1.0, training=True)
    jax.block_until_ready((sim, dl, cl, el))

    r_sim, r_dl, r_cl, r_el = _reference(x, prototypes, 1.0)
    assert jnp.allclose(sim, r_sim, atol=1e-2, rtol=1e-2)
    assert jnp.allclose(dl, r_dl, atol=1e-2, rtol=1e-2)
    assert jnp.allclose(cl, r_cl, atol=1e-2, rtol=1e-2)
    assert jnp.allclose(el, r_el, atol=1e-2, rtol=1e-2)

    # Second config exercises the multi-tile grid + row/col/D padding paths.
    N2 = 20
    x2 = jax.random.normal(kx2, (N2, D), dtype=jnp.float32)
    sim2, (dl2, cl2, el2) = prototypes_forward(x2, prototypes, dmin=1.0,
                                               training=True, block_n=8)
    jax.block_until_ready((sim2, dl2, cl2, el2))
    r_sim2, r_dl2, r_cl2, r_el2 = _reference(x2, prototypes, 1.0)
    assert jnp.allclose(sim2, r_sim2, atol=1e-2, rtol=1e-2)
    assert jnp.allclose(dl2, r_dl2, atol=1e-2, rtol=1e-2)
    assert jnp.allclose(cl2, r_cl2, atol=1e-2, rtol=1e-2)
    assert jnp.allclose(el2, r_el2, atol=1e-2, rtol=1e-2)

    # Inference path (losses are zeros, matching the torch module's eval mode).
    sim_eval, _ = prototypes_forward(x, prototypes, training=False)
    jax.block_until_ready(sim_eval)

    print("KERNEL_OK")
</pallas_src>

<mosaic_0001>
module attributes {stable_mosaic.version = 11 : i64} {
  func.func @_prototypes_kernel(%arg0: i32, %arg1: memref<8x128xf32, #tpu.memory_space<vmem>>, %arg2: memref<128x128xf32, #tpu.memory_space<vmem>>, %arg3: memref<1x128xf32, #tpu.memory_space<vmem>>, %arg4: memref<8x128xf32, #tpu.memory_space<vmem>>, %arg5: memref<1x1xf32, #tpu.memory_space<vmem>>, %arg6: memref<1x1xf32, #tpu.memory_space<vmem>>, %arg7: memref<1x1xf32, #tpu.memory_space<vmem>>, %arg8: memref<1x128xf32, #tpu.memory_space<vmem>>) attributes {dimension_semantics = [#tpu.dimension_semantics<arbitrary>], iteration_bounds = array<i64: 1>, scalar_prefetch = 0 : i64, scratch_operands = 1 : i64, tpu.core_type = #tpu.core_type<tc>, window_params = [{transform_indices = @transform_0, window_bounds = array<i64: 8, 128>}, {pipeline_mode = #tpu.pipeline_mode<synchronous>, transform_indices = @transform_1, window_bounds = array<i64: 128, 128>}, {pipeline_mode = #tpu.pipeline_mode<synchronous>, transform_indices = @transform_2, window_bounds = array<i64: 1, 128>}, {transform_indices = @transform_3, window_bounds = array<i64: 8, 128>}, {pipeline_mode = #tpu.pipeline_mode<synchronous>, transform_indices = @transform_4, window_bounds = array<i64: 1, 1>}, {pipeline_mode = #tpu.pipeline_mode<synchronous>, transform_indices = @transform_5, window_bounds = array<i64: 1, 1>}, {pipeline_mode = #tpu.pipeline_mode<synchronous>, transform_indices = @transform_6, window_bounds = array<i64: 1, 1>}]} {
    %c0 = arith.constant 0 : index
    %c0_0 = arith.constant 0 : index
    %0 = vector.load %arg2[%c0, %c0_0] : memref<128x128xf32, #tpu.memory_space<vmem>>, vector<128x128xf32>
    %c0_1 = arith.constant 0 : index
    %c0_2 = arith.constant 0 : index
    %1 = vector.load %arg3[%c0_1, %c0_2] : memref<1x128xf32, #tpu.memory_space<vmem>>, vector<1x128xf32>
    %c0_i32 = arith.constant 0 : i32
    %2 = arith.cmpi eq, %arg0, %c0_i32 : i32
    %3 = arith.extui %2 : i1 to i32
    %c0_i32_3 = arith.constant 0 : i32
    %4 = arith.cmpi ne, %3, %c0_i32_3 : i32
    scf.if %4 {
      %cst_33 = arith.constant 1.000000e+30 : f32
      %55 = vector.broadcast %cst_33 : f32 to vector<1x128xf32>
      %c0_34 = arith.constant 0 : index
      %c0_35 = arith.constant 0 : index
      %56 = vector.load %arg8[%c0_34, %c0_35] : memref<1x128xf32, #tpu.memory_space<vmem>>, vector<1x128xf32>
      tpu.vector_store %arg8[%c0_34, %c0_35], %55 {strides = array<i32>} : memref<1x128xf32, #tpu.memory_space<vmem>>, vector<1x128xf32>,
      %cst_36 = arith.constant 0.000000e+00 : f32
      %57 = vector.broadcast %cst_36 : f32 to vector<1x1xf32>
      %c0_37 = arith.constant 0 : index
      %c0_38 = arith.constant 0 : index
      %58 = vector.load %arg7[%c0_37, %c0_38] : memref<1x1xf32, #tpu.memory_space<vmem>>, vector<1x1xf32>
      tpu.vector_store %arg7[%c0_37, %c0_38], %57 {strides = array<i32>} : memref<1x1xf32, #tpu.memory_space<vmem>>, vector<1x1xf32>,
      %c0_39 = arith.constant 0 : index
      %c0_40 = arith.constant 0 : index
      %59 = vector.load %arg2[%c0_39, %c0_40] : memref<128x128xf32, #tpu.memory_space<vmem>>, vector<128x128xf32>
      %c0_41 = arith.constant 0 : index
      %c0_42 = arith.constant 0 : index
      %60 = vector.load %arg2[%c0_41, %c0_42] : memref<128x128xf32, #tpu.memory_space<vmem>>, vector<128x128xf32>
      %cst_43 = arith.constant dense<0.000000e+00> : vector<128x128xf32>
      %61 = tpu.matmul %59, %60, %cst_43 {dimension_numbers = #tpu.dot_dimension_numbers<[1], [1], [0], [0], [0, 0, 1, 0], [], []>} : vector<128x128xf32>, vector<128x128xf32>, vector<128x128xf32> -> vector<128x128xf32>
      %62 = arith.mulf %0, %0 : vector<128x128xf32>
      %cst_44 = arith.constant dense<0.000000e+00> : vector<128xf32>
      %63 = vector.multi_reduction <add>, %62, %cst_44 [1] : vector<128x128xf32> to vector<128xf32>
      %64 = vector.shape_cast %63 : vector<128xf32> to vector<128x1xf32>
      %65 = vector.broadcast %64 : vector<128x1xf32> to vector<128x128xf32>
      %66 = vector.broadcast %1 : vector<1x128xf32> to vector<128x128xf32>
      %67 = arith.addf %65, %66 : vector<128x128xf32>
      %cst_45 = arith.constant 2.000000e+00 : f32
      %68 = vector.broadcast %cst_45 : f32 to vector<128x128xf32>
      %69 = arith.mulf %68, %61 : vector<128x128xf32>
      %70 = arith.subf %67, %69 : vector<128x128xf32>
      %cst_46 = arith.constant 0.000000e+00 : f32
      %71 = vector.broadcast %cst_46 : f32 to vector<128x128xf32>
      %72 = arith.maximumf %70, %71 : vector<128x128xf32>
      %73 = math.sqrt %72 : vector<128x128xf32>
      %cst_47 = arith.constant 1.000000e+00 : f32
      %74 = vector.broadcast %cst_47 : f32 to vector<128x128xf32>
      %75 = arith.subf %74, %73 : vector<128x128xf32>
      %cst_48 = arith.constant 0.000000e+00 : f32
      %76 = vector.broadcast %cst_48 : f32 to vector<128x128xf32>
      %77 = arith.maximumf %75, %76 : vector<128x128xf32>
      %78 = tpu.iota {dimensions = array<i32: 0>} : vector<128x128xi32>
      %79 = tpu.iota {dimensions = array<i32: 1>} : vector<128x128xi32>
      %80 = arith.cmpi ne, %78, %79 : vector<128x128xi32>
      %c4_i32_49 = arith.constant 4 : i32
      %81 = vector.broadcast %c4_i32_49 : i32 to vector<128x128xi32>
      %82 = arith.cmpi slt, %78, %81 : vector<128x128xi32>
      %83 = arith.andi %80, %82 : vector<128x128xi1>
      %c4_i32_50 = arith.constant 4 : i32
      %84 = vector.broadcast %c4_i32_50 : i32 to vector<128x128xi32>
      %85 = arith.cmpi slt, %79, %84 : vector<128x128xi32>
      %86 = arith.andi %83, %85 : vector<128x128xi1>
      %87 = arith.extui %86 : vector<128x128xi1> to vector<128x128xi32>
      %88 = arith.sitofp %87 : vector<128x128xi32> to vector<128x128xf32>
      %89 = arith.mulf %77, %88 : vector<128x128xf32>
      %90 = arith.mulf %89, %89 : vector<128x128xf32>
      %cst_51 = arith.constant dense<0.000000e+00> : vector<128xf32>
      %91 = vector.multi_reduction <add>, %90, %cst_51 [1] : vector<128x128xf32> to vector<128xf32>
      %92 = vector.shape_cast %91 : vector<128xf32> to vector<128x1xf32>
      %cst_52 = arith.constant dense<0.000000e+00> : vector<1xf32>
      %93 = vector.multi_reduction <add>, %92, %cst_52 [0] : vector<128x1xf32> to vector<1xf32>
      %94 = vector.shape_cast %93 : vector<1xf32> to vector<1x1xf32>
      %cst_53 = arith.constant 5.000000e-01 : f32
      %95 = vector.broadcast %cst_53 : f32 to vector<1x1xf32>
      %96 = arith.mulf %95, %94 : vector<1x1xf32>
      %c0_54 = arith.constant 0 : index
      %c0_55 = arith.constant 0 : index
      %97 = vector.load %arg5[%c0_54, %c0_55] : memref<1x1xf32, #tpu.memory_space<vmem>>, vector<1x1xf32>
      tpu.vector_store %arg5[%c0_54, %c0_55], %96 {strides = array<i32>} : memref<1x1xf32, #tpu.memory_space<vmem>>, vector<1x1xf32>,
    } else {
    }
    %c0_4 = arith.constant 0 : index
    %c0_5 = arith.constant 0 : index
    %5 = vector.load %arg1[%c0_4, %c0_5] : memref<8x128xf32, #tpu.memory_space<vmem>>, vector<8x128xf32>
    %c0_6 = arith.constant 0 : index
    %c0_7 = arith.constant 0 : index
    %6 = vector.load %arg1[%c0_6, %c0_7] : memref<8x128xf32, #tpu.memory_space<vmem>>, vector<8x128xf32>
    %c0_8 = arith.constant 0 : index
    %c0_9 = arith.constant 0 : index
    %7 = vector.load %arg2[%c0_8, %c0_9] : memref<128x128xf32, #tpu.memory_space<vmem>>, vector<128x128xf32>
    %cst = arith.constant dense<0.000000e+00> : vector<8x128xf32>
    %8 = tpu.matmul %6, %7, %cst {dimension_numbers = #tpu.dot_dimension_numbers<[1], [1], [0], [0], [0, 0, 1, 0], [], []>} : vector<8x128xf32>, vector<128x128xf32>, vector<8x128xf32> -> vector<8x128xf32>
    %9 = arith.mulf %5, %5 : vector<8x128xf32>
    %cst_10 = arith.constant dense<0.000000e+00> : vector<8xf32>
    %10 = vector.multi_reduction <add>, %9, %cst_10 [1] : vector<8x128xf32> to vector<8xf32>
    %11 = vector.shape_cast %10 : vector<8xf32> to vector<8x1xf32>
    %12 = vector.broadcast %11 : vector<8x1xf32> to vector<8x128xf32>
    %13 = vector.broadcast %1 : vector<1x128xf32> to vector<8x128xf32>
    %14 = arith.addf %12, %13 : vector<8x128xf32>
    %cst_11 = arith.constant 2.000000e+00 : f32
    %15 = vector.broadcast %cst_11 : f32 to vector<8x128xf32>
    %16 = arith.mulf %15, %8 : vector<8x128xf32>
    %17 = arith.subf %14, %16 : vector<8x128xf32>
    %cst_12 = arith.constant 0.000000e+00 : f32
    %18 = vector.broadcast %cst_12 : f32 to vector<8x128xf32>
    %19 = arith.maximumf %17, %18 : vector<8x128xf32>
    %20 = tpu.iota {dimensions = array<i32: 1>} : vector<8x128xi32>
    %c4_i32 = arith.constant 4 : i32
    %21 = vector.broadcast %c4_i32 : i32 to vector<8x128xi32>
    %22 = arith.cmpi slt, %20, %21 : vector<8x128xi32>
    %cst_13 = arith.constant 1.000000e+30 : f32
    %23 = vector.broadcast %cst_13 : f32 to vector<8x128xf32>
    %24 = arith.select %22, %19, %23 : vector<8x128xi1>, vector<8x128xf32>
    %25 = math.sqrt %24 : vector<8x128xf32>
    %cst_14 = arith.constant 0.000000e+00 : f32
    %26 = vector.broadcast %cst_14 : f32 to vector<8x128xf32>
    %27 = arith.subf %26, %25 : vector<8x128xf32>
    %28 = math.exp %27 : vector<8x128xf32>
    %c0_15 = arith.constant 0 : index
    %c0_16 = arith.constant 0 : index
    %29 = vector.load %arg4[%c0_15, %c0_16] : memref<8x128xf32, #tpu.memory_space<vmem>>, vector<8x128xf32>
    tpu.vector_store %arg4[%c0_15, %c0_16], %28 {strides = array<i32>} : memref<8x128xf32, #tpu.memory_space<vmem>>, vector<8x128xf32>,
    %c8_i32 = arith.constant 8 : i32
    %30 = arith.muli %arg0, %c8_i32 : i32
    %31 = tpu.iota {dimensions = array<i32: 0>} : vector<8x128xi32>
    %32 = vector.broadcast %30 : i32 to vector<8x128xi32>
    %33 = arith.addi %32, %31 : vector<8x128xi32>
    %c8_i32_17 = arith.constant 8 : i32
    %34 = vector.broadcast %c8_i32_17 : i32 to vector<8x128xi32>
    %35 = arith.cmpi slt, %33, %34 : vector<8x128xi32>
    %cst_18 = arith.constant 1.000000e+30 : f32
    %36 = vector.broadcast %cst_18 : f32 to vector<8x128xf32>
    %37 = arith.select %35, %25, %36 : vector<8x128xi1>, vector<8x128xf32>
    %c0_19 = arith.constant 0 : index
    %c0_20 = arith.constant 0 : index
    %38 = vector.load %arg8[%c0_19, %c0_20] : memref<1x128xf32, #tpu.memory_space<vmem>>, vector<1x128xf32>
    %cst_21 = arith.constant dense<0x7F800000> : vector<128xf32>
    %39 = vector.multi_reduction <minimumf>, %37, %cst_21 [0] : vector<8x128xf32> to vector<128xf32>
    %40 = vector.shape_cast %39 : vector<128xf32> to vector<1x128xf32>
    %41 = arith.minimumf %38, %40 : vector<1x128xf32>
    %c0_22 = arith.constant 0 : index
    %c0_23 = arith.constant 0 : index
    %42 = vector.load %arg8[%c0_22, %c0_23] : memref<1x128xf32, #tpu.memory_space<vmem>>, vector<1x128xf32>
    tpu.vector_store %arg8[%c0_22, %c0_23], %41 {strides = array<i32>} : memref<1x128xf32, #tpu.memory_space<vmem>>, vector<1x128xf32>,
    %cst_24 = arith.constant 0.000000e+00 : f32
    %43 = vector.broadcast %cst_24 : f32 to vector<8x128xf32>
    %44 = arith.select %35, %25, %43 : vector<8x128xi1>, vector<8x128xf32>
    %c0_25 = arith.constant 0 : index
    %c0_26 = arith.constant 0 : index
    %45 = vector.load %arg7[%c0_25, %c0_26] : memref<1x1xf32, #tpu.memory_space<vmem>>, vector<1x1xf32>
    %cst_27 = arith.constant dense<0x7F800000> : vector<8xf32>
    %46 = vector.multi_reduction <minimumf>, %44, %cst_27 [1] : vector<8x128xf32> to vector<8xf32>
    %47 = vector.shape_cast %46 : vector<8xf32> to vector<8x1xf32>
    %cst_28 = arith.constant dense<0.000000e+00> : vector<1xf32>
    %48 = vector.multi_reduction <add>, %47, %cst_28 [0] : vector<8x1xf32> to vector<1xf32>
    %49 = vector.shape_cast %48 : vector<1xf32> to vector<1x1xf32>
    %50 = arith.addf %45, %49 : vector<1x1xf32>
    %c0_29 = arith.constant 0 : index
    %c0_30 = arith.constant 0 : index
    %51 = vector.load %arg7[%c0_29, %c0_30] : memref<1x1xf32, #tpu.memory_space<vmem>>, vector<1x1xf32>
    tpu.vector_store %arg7[%c0_29, %c0_30], %50 {strides = array<i32>} : memref<1x1xf32, #tpu.memory_space<vmem>>, vector<1x1xf32>,
    %c0_i32_31 = arith.constant 0 : i32
    %52 = arith.cmpi eq, %arg0, %c0_i32_31 : i32
    %53 = arith.extui %52 : i1 to i32
    %c0_i32_32 = arith.constant 0 : i32
    %54 = arith.cmpi ne, %53, %c0_i32_32 : i32
    scf.if %54 {
      %55 = tpu.iota {dimensions = array<i32: 1>} : vector<1x128xi32>
      %c4_i32_33 = arith.constant 4 : i32
      %56 = vector.broadcast %c4_i32_33 : i32 to vector<1x128xi32>
      %57 = arith.cmpi slt, %55, %56 : vector<1x128xi32>
      %c0_34 = arith.constant 0 : index
      %c0_35 = arith.constant 0 : index
      %58 = vector.load %arg8[%c0_34, %c0_35] : memref<1x128xf32, #tpu.memory_space<vmem>>, vector<1x128xf32>
      %cst_36 = arith.constant 0.000000e+00 : f32
      %59 = vector.broadcast %cst_36 : f32 to vector<1x128xf32>
      %60 = arith.select %57, %58, %59 : vector<1x128xi1>, vector<1x128xf32>
      %cst_37 = arith.constant dense<0.000000e+00> : vector<1xf32>
      %61 = vector.multi_reduction <add>, %60, %cst_37 [1] : vector<1x128xf32> to vector<1xf32>
      %62 = vector.shape_cast %61 : vector<1xf32> to vector<1x1xf32>
      %c0_38 = arith.constant 0 : index
      %c0_39 = arith.constant 0 : index
      %63 = vector.load %arg6[%c0_38, %c0_39] : memref<1x1xf32, #tpu.memory_space<vmem>>, vector<1x1xf32>
      tpu.vector_store %arg6[%c0_38, %c0_39], %62 {strides = array<i32>} : memref<1x1xf32, #tpu.memory_space<vmem>>, vector<1x1xf32>,
    } else {
    }
    return
  }
  func.func @transform_0(%arg0: i32) -> (i32, i32) {
    %c0_i32 = arith.constant 0 : i32
    %c0_i32_0 = arith.constant 0 : i32
    return %arg0, %c0_i32 : i32, i32
  }
  func.func @transform_1(%arg0: i32) -> (i32, i32) {
    %c0_i32 = arith.constant 0 : i32
    %c0_i32_0 = arith.constant 0 : i32
    %c0_i32_1 = arith.constant 0 : i32
    return %c0_i32, %c0_i32_0 : i32, i32
  }
  func.func @transform_2(%arg0: i32) -> (i32, i32) {
    %c0_i32 = arith.constant 0 : i32
    %c0_i32_0 = arith.constant 0 : i32
    %c0_i32_1 = arith.constant 0 : i32
    return %c0_i32, %c0_i32_0 : i32, i32
  }
  func.func @transform_3(%arg0: i32) -> (i32, i32) {
    %c0_i32 = arith.constant 0 : i32
    %c0_i32_0 = arith.constant 0 : i32
    return %arg0, %c0_i32 : i32, i32
  }
  func.func @transform_4(%arg0: i32) -> (i32, i32) {
    %c0_i32 = arith.constant 0 : i32
    %c0_i32_0 = arith.constant 0 : i32
    %c0_i32_1 = arith.constant 0 : i32
    return %c0_i32, %c0_i32_0 : i32, i32
  }
  func.func @transform_5(%arg0: i32) -> (i32, i32) {
    %c0_i32 = arith.constant 0 : i32
    %c0_i32_0 = arith.constant 0 : i32
    %c0_i32_1 = arith.constant 0 : i32
    return %c0_i32, %c0_i32_0 : i32, i32
  }
  func.func @transform_6(%arg0: i32) -> (i32, i32) {
    %c0_i32 = arith.constant 0 : i32
    %c0_i32_0 = arith.constant 0 : i32
    %c0_i32_1 = arith.constant 0 : i32
    return %c0_i32, %c0_i32_0 : i32, i32
  }
}

</mosaic_0001>

<bundles_post_ra>
// kernel: tpu_custom_call.1
= control target key start
LH: loop header
LB: loop body
LE: loop exit
PB: predicated region body
PF: predicated region fallthrough
CT: control target
= control target key end

     0   :  { %12 = vsyncpa [#allocation4], 0  ;;  %s1617_s0 = inlined_call_operand.hbm [shape: f32[8,128], index: 0, kind: input, shape index: {}]   ;;  %s1618_s1 = inlined_call_operand.hbm [shape: f32[128,128], index: 1, kind: input, shape index: {}]   ;;  %s1619_s2 = inlined_call_operand.vmem [shape: f32[1,128], index: 2, kind: input, shape index: {}]   ;;  %s1620_s3 = inlined_call_operand.hbm [shape: f32[8,128], index: 3, kind: output, shape index: {0}]   ;;  %s1621_s4 = inlined_call_operand.hbm [shape: f32[1,1], index: 4, kind: output, shape index: {1}]   ;;  %s1622_s5 = inlined_call_operand.hbm [shape: f32[1,1], index: 5, kind: output, shape index: {2}]   ;;  %s1623_s6 = inlined_call_operand.hbm [shape: f32[1,1], index: 6, kind: output, shape index: {3}]  }
   0x1   :  { %13 = vsyncpa [#allocation7], 0 }
   0x2   :  { %14 = vsyncpa [#allocation5], 0 }
   0x3   :  { %15 = vsyncpa [#allocation10], 0 }
   0x4   :  { %16 = vsyncpa [#allocation13], 0  ;;  %s22_s23 = sshll.u32 %s1617_s0, 4  ;;  %s1103_s24 = smov [#allocation3]   ;;  %s23_s23 = int_to_ptr.hbm [resolvable:$true] %s22_s23 }
   0x5   :  { %s24_s25 = sshll.u32 %s1103_s24, 4  ;;  %s32_s28 = sshll.u32 %s1618_s1, 4  ;;  %s25_s25 = int_to_ptr.vmem [resolvable:$true] %s24_s25  ;;  %s33_s28 = int_to_ptr.hbm [resolvable:$true] %s32_s28 }
   0x6   :  { %27 = dma.hbm_to_vmem [thread:$0]  %s23_s23, 128, %s25_s25, [#allocation4]  }
   0x7   :  { %s1104_s29 = smov [#allocation6]   ;;  %s1105_s7 = smov 128  }
   0x8   :  { %s34_s30 = sshll.u32 %s1104_s29, 4  ;;  %s1106_s8 = smov 8   ;;  %s35_s30 = int_to_ptr.vmem [resolvable:$true] %s34_s30 }
   0x9   :  { %40 = dma.hbm_to_vmem [thread:$0]  %s33_s28, 2048, %s35_s30, [#allocation7], %s1105_s7, %s1105_s7, %s1106_s8  }
   0xa   :  { %1093 = dma.done.wait [#allocation4], 128  }
   0xb   :  { %1094 = vsyncadd [#allocation4], 4294967168 }
   0xc   :  { %1095 = dma.done.wait [#allocation7], 2048  }
   0xd   :  { %1096 = vsyncadd [#allocation7], 4294965248  ;;  %v1154_v0 = vld [vmem:[#allocation6 + $0x78] sm:$0xff]  ;;  %v1159_v1 = vld [vmem:[#allocation6 + $0x70] sm:$0xff]  ;;  %v495_v48 = vlaneseq  ;;  %v1107_v60 = vmov 1e+30  }
   0xe   :  { %91 = vmatpush.xpose.msra.mxu0 %v1154_v0  ;;  %870 = vmatpush.xpose.msra.mxu2 %v1154_v0  ;;  %v1165_v2 = vld [vmem:[#allocation6 + $0x68] sm:$0xff]  ;;  %v1171_v3 = vld [vmem:[#allocation6 + $0x60] sm:$0xff]  ;;  %v1177_v4 = vld [vmem:[#allocation6 + $0x58] sm:$0xff]  ;;  %v170_v32 = vmul.f32 %v1159_v1, %v1159_v1  ;;  %v171_v33 = vmul.f32 %v1154_v0, %v1154_v0  ;;  %72 = vst [vmem:[#allocation2] sm:$0x1] %v1107_v60  ;;  %s811_s12 = sshll.u32 %s1620_s3, 4  ;;  %s812_s12 = int_to_ptr.hbm [resolvable:$true] %s811_s12 }
   0xf   :  { %871 = vmatpush.xpose.msra.mxu3 %v1154_v0  ;;  %715 = vmatpush.xpose.msra.mxu1 %v1154_v0  ;;  %v1183_v5 = vld [vmem:[#allocation6 + $0x50] sm:$0xff]  ;;  %v1189_v6 = vld [vmem:[#allocation6 + $0x48] sm:$0xff]  ;;  %v1195_v7 = vld [vmem:[#allocation6 + $0x40] sm:$0xff]  ;;  %v169_v28 = vmul.f32 %v1165_v2, %v1165_v2  ;;  %v167_v29 = vmul.f32 %v1177_v4, %v1177_v4  ;;  %v168_v31 = vmul.f32 %v1171_v3, %v1171_v3  ;;  %v496_v53 = vshrl.u32 %v495_v48, 7  ;;  %s1110_s3 = smov [#allocation9]   ;;  %s822_s16 = sshll.u32 %s1621_s4, 4  ;;  %s823_s16 = int_to_ptr.hbm [resolvable:$true] %s822_s16 }
  0x10   :  { %v1198_v8 = vld [vmem:[#allocation6] sm:$0xff]  ;;  %v1203_v9 = vld [vmem:[#allocation6 + $0x38] sm:$0xff]  ;;  %v1212_v13 = vld [vmem:[#allocation6 + $0x10] sm:$0xff]  ;;  %v164_v22 = vmul.f32 %v1195_v7, %v1195_v7  ;;  %v165_v25 = vmul.f32 %v1189_v6, %v1189_v6  ;;  %v166_v26 = vmul.f32 %v1183_v5, %v1183_v5  ;;  %v1286_v54 = vand.u32 127, %v495_v48  ;;  %s820_s13 = sshll.u32 %s1110_s3, 4  ;;  %s1111_s17 = smov [#allocation11]   ;;  %s821_s13 = int_to_ptr.vmem [resolvable:$true] %s820_s13 }
  0x11   :  { %v1205_v10 = vld [vmem:[#allocation6 + $0x20] sm:$0xff]  ;;  %v156_v12 = vmul.f32 %v1198_v8, %v1198_v8  ;;  %v158_v14 = vmul.f32 %v1212_v13, %v1212_v13  ;;  %v1219_v15 = vld [vmem:[#allocation6 + $0x30] sm:$0xff]  ;;  %v80_v16 = vld [vmem:[#allocation6 + $0x28] sm:$0xff]  ;;  %v163_v24 = vmul.f32 %v1203_v9, %v1203_v9  ;;  %vm530_vm1 = vcmp.lt.s32.totalorder %v496_v53, 4  ;;  %s831_s18 = sshll.u32 %s1111_s17, 4  ;;  %s833_s21 = sshll.u32 %s1622_s5, 4  ;;  %s832_s18 = int_to_ptr.vmem [resolvable:$true] %s831_s18  ;;  %s834_s21 = int_to_ptr.hbm [resolvable:$true] %s833_s21 }
  0x12   :  { %92 = vmatpush.xpose.msra.mxu0 %v1159_v1  ;;  %872 = vmatpush.xpose.msra.mxu2 %v1159_v1  ;;  %v160_v11 = vmul.f32 %v1205_v10, %v1205_v10  ;;  %v76_v17 = vld [vmem:[#allocation6 + $0x8] sm:$0xff]  ;;  %v161_v18 = vmul.f32 %v80_v16, %v80_v16  ;;  %v78_v20 = vld [vmem:[#allocation6 + $0x18] sm:$0xff]  ;;  %v162_v23 = vmul.f32 %v1219_v15, %v1219_v15  ;;  %v1278_v41 = vld [vmem:[%s1619_s2] ss:$0 sm:$0xff]  ;;  %vm562_vm3 = vcmp.lt.s32.totalorder %v1286_v54, 4  ;;  %s1109_s2 = smov [#allocation8]  }
  0x13   :  { %873 = vmatpush.xpose.msra.mxu3 %v1159_v1  ;;  %716 = vmatpush.xpose.msra.mxu1 %v1159_v1  ;;  %v157_v19 = vmul.f32 %v76_v17, %v76_v17  ;;  %v159_v21 = vmul.f32 %v78_v20, %v78_v20  ;;  %v698_v27 = vld [vmem:[#allocation3] sm:$0xff]  ;;  %vm514_vm0 = vcmp.ne.s32.totalorder %v496_v53, %v1286_v54  ;;  %s809_s9 = sshll.u32 %s1109_s2, 4  ;;  %s1112_s22 = smov [#allocation12]   ;;  %s810_s9 = int_to_ptr.vmem [resolvable:$true] %s809_s9 }
  0x14   :  { %180 = vadd.xlane.f32.xlu2 %v160_v11  ;;  %172 = vadd.xlane.f32.xlu0 %v156_v12  ;;  %v735_v30 = vmul.f32 %v698_v27, %v698_v27  ;;  %vm1295_vm2 = vmand %vm514_vm0, %vm530_vm1  ;;  %s842_s23 = sshll.u32 %s1112_s22, 4  ;;  %s844_s26 = sshll.u32 %s1623_s6, 4  ;;  %s843_s23 = int_to_ptr.vmem [resolvable:$true] %s842_s23  ;;  %s845_s26 = int_to_ptr.hbm [resolvable:$true] %s844_s26 }
  0x15   :  { %176 = vadd.xlane.f32.xlu1 %v158_v14  ;;  %vm563_vm4 = vmand %vm1295_vm2, %vm562_vm3 }
  0x16   :  { %93 = vmatpush.xpose.msra.mxu0 %v1165_v2  ;;  %874 = vmatpush.xpose.msra.mxu2 %v1165_v2 }
  0x17   :  { %875 = vmatpush.xpose.msra.mxu3 %v1165_v2  ;;  %717 = vmatpush.xpose.msra.mxu1 %v1165_v2 }
  0x1a   :  { %94 = vmatpush.xpose.msra.mxu0 %v1171_v3  ;;  %876 = vmatpush.xpose.msra.mxu2 %v1171_v3 }
  0x1b   :  { %877 = vmatpush.xpose.msra.mxu3 %v1171_v3  ;;  %718 = vmatpush.xpose.msra.mxu1 %v1171_v3 }
  0x1c   :  { %182 = vadd.xlane.f32.xlu2 %v161_v18  ;;  %174 = vadd.xlane.f32.xlu0 %v157_v19 }
  0x1d   :  { %178 = vadd.xlane.f32.xlu1 %v159_v21 }
  0x1e   :  { %95 = vmatpush.xpose.msra.mxu0 %v1177_v4  ;;  %878 = vmatpush.xpose.msra.mxu2 %v1177_v4 }
  0x1f   :  { %879 = vmatpush.xpose.msra.mxu3 %v1177_v4  ;;  %719 = vmatpush.xpose.msra.mxu1 %v1177_v4 }
  0x22   :  { %96 = vmatpush.xpose.msra.mxu0 %v1183_v5  ;;  %880 = vmatpush.xpose.msra.mxu2 %v1183_v5 }
  0x23   :  { %881 = vmatpush.xpose.msra.mxu3 %v1183_v5  ;;  %720 = vmatpush.xpose.msra.mxu1 %v1183_v5 }
  0x24   :  { %188 = vadd.xlane.f32.xlu2 %v164_v22  ;;  %184 = vadd.xlane.f32.xlu0 %v162_v23 }
  0x25   :  { %186 = vadd.xlane.f32.xlu1 %v163_v24 }
  0x26   :  { %97 = vmatpush.xpose.msra.mxu0 %v1189_v6  ;;  %882 = vmatpush.xpose.msra.mxu2 %v1189_v6 }
  0x27   :  { %883 = vmatpush.xpose.msra.mxu3 %v1189_v6  ;;  %721 = vmatpush.xpose.msra.mxu1 %v1189_v6 }
  0x2a   :  { %98 = vmatpush.xpose.msra.mxu0 %v1195_v7  ;;  %884 = vmatpush.xpose.msra.mxu2 %v1195_v7 }
  0x2b   :  { %885 = vmatpush.xpose.msra.mxu3 %v1195_v7  ;;  %722 = vmatpush.xpose.msra.mxu1 %v1195_v7 }
  0x2c   :  { %190 = vadd.xlane.f32.xlu0 %v165_v25  ;;  %194 = vadd.xlane.f32.xlu2 %v167_v29 }
  0x2d   :  { %192 = vadd.xlane.f32.xlu1 %v166_v26 }
  0x2e   :  { %99 = vmatpush.xpose.msra.mxu0 %v1203_v9  ;;  %886 = vmatpush.xpose.msra.mxu2 %v1203_v9 }
  0x2f   :  { %887 = vmatpush.xpose.msra.mxu3 %v1203_v9  ;;  %723 = vmatpush.xpose.msra.mxu1 %v1203_v9 }
  0x32   :  { %100 = vmatpush.xpose.msra.mxu0 %v1219_v15  ;;  %888 = vmatpush.xpose.msra.mxu2 %v1219_v15 }
  0x33   :  { %889 = vmatpush.xpose.msra.mxu3 %v1219_v15  ;;  %724 = vmatpush.xpose.msra.mxu1 %v1219_v15 }
  0x34   :  { %196 = vadd.xlane.f32.xlu0 %v168_v31  ;;  %200 = vadd.xlane.f32.xlu2 %v170_v32 }
  0x35   :  { %198 = vadd.xlane.f32.xlu1 %v169_v28 }
  0x36   :  { %101 = vmatpush.xpose.msra.mxu0 %v80_v16  ;;  %890 = vmatpush.xpose.msra.mxu2 %v80_v16 }
  0x37   :  { %891 = vmatpush.xpose.msra.mxu3 %v80_v16  ;;  %725 = vmatpush.xpose.msra.mxu1 %v80_v16 }
  0x3a   :  { %102 = vmatpush.xpose.msra.mxu0 %v1205_v10  ;;  %892 = vmatpush.xpose.msra.mxu2 %v1205_v10 }
  0x3b   :  { %893 = vmatpush.xpose.msra.mxu3 %v1205_v10  ;;  %726 = vmatpush.xpose.msra.mxu1 %v1205_v10 }
  0x3c   :  { %202 = vadd.xlane.f32.xlu0 %v171_v33 }
  0x3d   :  { %736 = vadd.xlane.f32.xlu1 %v735_v30 }
  0x3e   :  { %103 = vmatpush.xpose.msra.mxu0 %v78_v20  ;;  %894 = vmatpush.xpose.msra.mxu2 %v78_v20 }
  0x3f   :  { %895 = vmatpush.xpose.msra.mxu3 %v78_v20  ;;  %727 = vmatpush.xpose.msra.mxu1 %v78_v20 }
  0x42   :  { %104 = vmatpush.xpose.msra.mxu0 %v1212_v13  ;;  %896 = vmatpush.xpose.msra.mxu2 %v1212_v13 }
  0x43   :  { %897 = vmatpush.xpose.msra.mxu3 %v1212_v13  ;;  %728 = vmatpush.xpose.msra.mxu1 %v1212_v13 }
  0x46   :  { %105 = vmatpush.xpose.msra.mxu0 %v76_v17  ;;  %898 = vmatpush.xpose.msra.mxu2 %v76_v17 }
  0x47   :  { %899 = vmatpush.xpose.msra.mxu3 %v76_v17  ;;  %729 = vmatpush.xpose.msra.mxu1 %v76_v17 }
  0x4a   :  { %106 = vmatpush.xpose.msra.mxu0 %v1198_v8  ;;  %900 = vmatpush.xpose.msra.mxu2 %v1198_v8 }
  0x4b   :  { %901 = vmatpush.xpose.msra.mxu3 %v1198_v8  ;;  %730 = vmatpush.xpose.msra.mxu1 %v1198_v8 }
  0x4d   :  { %107 = vmatmul.f32.vlgmr.msra.gmra.mxu0 %v1198_v8  ;;  %116 = vmatmul.f32.vlgmr.msra.gmra.mxu2 %v78_v20 }
  0x4e   :  { %131 = vmatmul.f32.vlgmr.msra.gmra.mxu3 %v1195_v7  ;;  %731 = vmatmul.f32.vlgmr.msra.gmra.mxu1 %v698_v27 }
  0x55   :  { %110 = vmatmul.f32.gmra.mxu0 %v76_v17  ;;  %119 = vmatmul.f32.gmra.mxu2 %v1205_v10 }
  0x56   :  { %134 = vmatmul.f32.gmra.mxu3 %v1189_v6 }
  0x5d   :  { %113 = vmatmul.f32.gmra.mxu0 %v1212_v13  ;;  %122 = vmatmul.f32.gmra.mxu2 %v80_v16 }
  0x5e   :  { %137 = vmatmul.f32.gmra.mxu3 %v1183_v5 }
  0x65   :  { %125 = vmatmul.f32.gmra.mxu2 %v1219_v15 }
  0x66   :  { %140 = vmatmul.f32.gmra.mxu3 %v1177_v4 }
  0x6d   :  { %128 = vmatmul.f32.gmra.mxu2 %v1203_v9 }
  0x6e   :  { %143 = vmatmul.f32.gmra.mxu3 %v1171_v3 }
  0x76   :  { %146 = vmatmul.f32.gmra.mxu3 %v1165_v2 }
  0x7e   :  { %149 = vmatmul.f32.gmra.mxu3 %v1159_v1 }
  0x86   :  { %152 = vmatmul.f32.gmra.mxu3 %v1154_v0 }
  0x87   :  { %v173_v36 = vpop.xlane.xlu0 %172  ;;  %v181_v38 = vpop.xlane.xlu2 %180 }
  0x88   :  { %v177_v34 = vpop.xlane.xlu1 %176  ;;  %v207_v44 = vadd.f32 %v1278_v41, %v173_v36  ;;  %v211_v13 = vadd.f32 %v1278_v41, %v181_v38  ;;  %v1108_v36 = vmov 0.0  }
  0x89   :  { %v209_v14 = vadd.f32 %v1278_v41, %v177_v34  ;;  %v1341_v38 = vsel %vm563_vm4, 1.0, %v1108_v36 }
  0x8f   :  { %v175_v39 = vpop.xlane.xlu0 %174  ;;  %v183_v42 = vpop.xlane.xlu2 %182 }
  0x90   :  { %v179_v35 = vpop.xlane.xlu1 %178  ;;  %v208_v57 = vadd.f32 %v1278_v41, %v175_v39  ;;  %v1306_v16 = vadd.f32 %v1278_v41, %v183_v42 }
  0x91   :  { %v210_v51 = vadd.f32 %v1278_v41, %v179_v35 }
  0x97   :  { %v185_v46 = vpop.xlane.xlu0 %184  ;;  %v189_v52 = vpop.xlane.xlu2 %188 }
  0x98   :  { %v1271_v37 = vpop.xlane.xlu1 %186  ;;  %v215_v63 = vadd.f32 %v1278_v41, %v189_v52  ;;  %v1309_v17 = vadd.f32 %v1278_v41, %v185_v46 }
  0x99   :  { %v1327_v29 = vadd.f32 %v1278_v41, %v1271_v37 }
  0x9f   :  { %v191_v5 = vpop.xlane.xlu0 %190  ;;  %v195_v24 = vpop.xlane.xlu2 %194 }
  0xa0   :  { %v1273_v40 = vpop.xlane.xlu1 %192  ;;  %v216_v23 = vadd.f32 %v1278_v41, %v191_v5  ;;  %v1338_v34 = vadd.f32 %v1278_v41, %v195_v24 }
  0xa1   :  { %v1331_v32 = vadd.f32 %v1278_v41, %v1273_v40 }
  0xa7   :  { %v197_v37 = vpop.xlane.xlu0 %196 }
  0xa8   :  { %v1280_v43 = vpop.xlane.xlu1 %198 }
  0xa9   :  { %v1335_v33 = vadd.f32 %v1278_v41, %v1280_v43 }
  0xb0   :  { %v737_v61 = vpop.xlane.xlu1 %736 }
  0xb1   :  { %v741_v2 = vadd.f32 %v1278_v41, %v737_v61 }
  0xca   :  { %v108_v45 = vpop.f32.mrf.mxu0 }
  0xcb   :  { %v223_v47 = vmul.f32 2.0, %v108_v45  ;;  %v732_v56 = vpop.f32.mrf.mxu1 }
  0xcc   :  { %v742_v1 = vmul.f32 2.0, %v732_v56 }
  0xcd   :  { %v239_v49 = vsub.f32 %v207_v44, %v223_v47 }
  0xce   :  { %v743_v6 = vsub.f32 %v741_v2, %v742_v1 }
  0xcf   :  { %v1283_v50 = vmax.f32 %v239_v49, 0.0  ;;  %v1354_v49 = vadd.f32 %v1278_v41, %v197_v37 }
  0xd0   :  { %v117_v55 = vpop.f32.mrf.mxu2  ;;  %v744_v11 = vmax.f32 %v743_v6, 0.0 }
  0xd1   :  { %913 = vrsqrt.f32 %v1283_v50  ;;  %v226_v58 = vmul.f32 2.0, %v117_v55  ;;  %v132_v59 = vpop.f32.mrf.mxu3  ;;  %vm278_vm5 = vcmp.eq.f32.partialorder %v1283_v50, inf  ;;  %vm280_vm6 = vcmp.eq.f32.partialorder %v1283_v50, 0.0 }
  0xd2   :  { %v231_v62 = vmul.f32 2.0, %v132_v59  ;;  %v111_v0 = vpop.f32.mrf.mxu0  ;;  %v1314_v20 = vsel %vm562_vm3, %v744_v11, 1e+30  ;;  %v281_v48 = vand.u32 2147483648, %v1283_v50 }
  0xd3   :  { %v242_v3 = vsub.f32 %v210_v51, %v226_v58  ;;  %v224_v4 = vmul.f32 2.0, %v111_v0  ;;  %v759_v61 = vand.u32 2147483648, %v1314_v20  ;;  %vm756_vm8 = vcmp.eq.f32.partialorder %v1314_v20, inf }
  0xd4   :  { %v247_v9 = vsub.f32 %v215_v63, %v231_v62  ;;  %vm758_vm10 = vcmp.eq.f32.partialorder %v1314_v20, 0.0 }
  0xd5   :  { %v1293_v7 = vmax.f32 %v242_v3, 0.0  ;;  %v240_v8 = vsub.f32 %v208_v57, %v224_v4 }
  0xd6   :  { %v1322_v25 = vmax.f32 %v247_v9, 0.0 }
  0xd7   :  { %v914_v12 = vpop.eup %913  ;;  %915 = vrsqrt.f32 %v1293_v7  ;;  %v1303_v15 = vmax.f32 %v240_v8, 0.0  ;;  %v317_v56 = vand.u32 2147483648, %v1293_v7  ;;  %vm314_vm7 = vcmp.eq.f32.partialorder %v1293_v7, inf }
  0xd8   :  { %v120_v18 = vpop.f32.mrf.mxu2  ;;  %v272_v19 = vmul.f32 %v914_v12, %v1283_v50  ;;  %vm316_vm9 = vcmp.eq.f32.partialorder %v1293_v7, 0.0 }
  0xd9   :  { %917 = vrsqrt.f32 %v1303_v15  ;;  %v227_v21 = vmul.f32 2.0, %v120_v18  ;;  %v135_v22 = vpop.f32.mrf.mxu3  ;;  %vm290_vm11 = vcmp.eq.f32.partialorder %v1303_v15, inf  ;;  %v293_v4 = vand.u32 2147483648, %v1303_v15 }
  0xda   :  { %v232_v26 = vmul.f32 2.0, %v135_v22  ;;  %v114_v27 = vpop.f32.mrf.mxu0  ;;  %v273_v28 = vmul.f32 %v914_v12, %v272_v19  ;;  %919 = vrsqrt.f32 %v1314_v20  ;;  %vm292_vm12 = vcmp.eq.f32.partialorder %v1303_v15, 0.0 }
  0xdb   :  { %v243_v30 = vsub.f32 %v211_v13, %v227_v21  ;;  %v225_v31 = vmul.f32 2.0, %v114_v27  ;;  %921 = vrsqrt.f32 %v1322_v25 }
  0xdc   :  { %v274_v35 = vmul.f32 0.5, %v273_v28  ;;  %v248_v40 = vsub.f32 %v216_v23, %v232_v26 }
  0xdd   :  { %v916_v39 = vpop.eup %915  ;;  %v1343_v42 = vmax.f32 %v243_v30, 0.0  ;;  %v241_v44 = vsub.f32 %v209_v14, %v225_v31 }
  0xde   :  { %v275_v43 = vsub.f32 1.5, %v274_v35  ;;  %v308_v45 = vmul.f32 %v916_v39, %v1293_v7  ;;  %v1362_v62 = vmax.f32 %v248_v40, 0.0 }
  0xdf   :  { %v918_v46 = vpop.eup %917  ;;  %923 = vrsqrt.f32 %v1343_v42  ;;  %v1350_v47 = vmax.f32 %v241_v44, 0.0  ;;  %vm326_vm15 = vcmp.eq.f32.partialorder %v1343_v42, inf  ;;  %vm328_vm0 = vcmp.eq.f32.partialorder %v1343_v42, 0.0 }
  0xe0   :  { %v920_v51 = vpop.eup %919  ;;  %v123_v52 = vpop.f32.mrf.mxu2  ;;  %v276_v53 = vmul.f32 %v914_v12, %v275_v43  ;;  %v309_v55 = vmul.f32 %v916_v39, %v308_v45  ;;  %v284_v57 = vmul.f32 %v918_v46, %v1303_v15 }
  0xe1   :  { %925 = vrsqrt.f32 %v1350_v47  ;;  %v228_v58 = vmul.f32 2.0, %v123_v52  ;;  %v138_v59 = vpop.f32.mrf.mxu3  ;;  %v750_v60 = vmul.f32 %v920_v51, %v1314_v20  ;;  %v1371_v5 = vpop.eup %921  ;;  %v305_v24 = vand.u32 2147483648, %v1350_v47 }
  0xe2   :  { %v277_v63 = vmul.f32 %v276_v53, %v1283_v50  ;;  %v310_v0 = vmul.f32 0.5, %v309_v55  ;;  %v285_v1 = vmul.f32 %v918_v46, %v284_v57  ;;  %v233_v6 = vmul.f32 2.0, %v138_v59 }
  0xe3   :  { %v244_v2 = vsub.f32 %v1306_v16, %v228_v58  ;;  %v751_v3 = vmul.f32 %v920_v51, %v750_v60  ;;  %v377_v16 = vand.u32 2147483648, %v1322_v25  ;;  %927 = vrsqrt.f32 %v1362_v62 }
  0xe4   :  { %v279_v8 = vsel %vm278_vm5, %v1283_v50, %v277_v63  ;;  %v311_v9 = vsub.f32 1.5, %v310_v0  ;;  %v286_v10 = vmul.f32 0.5, %v285_v1  ;;  %v249_v50 = vsub.f32 %v1331_v32, %v233_v6 }
  0xe5   :  { %v1377_v11 = vpop.eup %923  ;;  %v1379_v12 = vmax.f32 %v244_v2, 0.0  ;;  %v282_v13 = vsel %vm280_vm6, %v281_v48, %v279_v8  ;;  %v752_v14 = vmul.f32 0.5, %v751_v3  ;;  %vm302_vm13 = vcmp.eq.f32.partialorder %v1350_v47, inf }
  0xe6   :  { %v463_v18 = vsub.f32 1.0, %v282_v13  ;;  %v312_v19 = vmul.f32 %v916_v39, %v311_v9  ;;  %v287_v21 = vsub.f32 1.5, %v286_v10  ;;  %v320_v26 = vmul.f32 %v1377_v11, %v1343_v42 }
  0xe7   :  { %v926_v22 = vpop.eup %925  ;;  %929 = vrsqrt.f32 %v1379_v12  ;;  %v753_v23 = vsub.f32 1.5, %v752_v14  ;;  %v329_v59 = vand.u32 2147483648, %v1343_v42  ;;  %vm304_vm14 = vcmp.eq.f32.partialorder %v1350_v47, 0.0 }
  0xe8   :  { %v126_v27 = vpop.f32.mrf.mxu2  ;;  %v479_v28 = vmax.f32 %v463_v18, 0.0  ;;  %v313_v30 = vmul.f32 %v312_v19, %v1293_v7  ;;  %v288_v31 = vmul.f32 %v918_v46, %v287_v21  ;;  %v296_v44 = vmul.f32 %v926_v22, %v1350_v47 }
  0xe9   :  { %v229_v35 = vmul.f32 2.0, %v126_v27  ;;  %v141_v37 = vpop.f32.mrf.mxu3  ;;  %v754_v39 = vmul.f32 %v920_v51, %v753_v23  ;;  %v321_v40 = vmul.f32 %v1377_v11, %v320_v26  ;;  %v1402_v55 = vpop.eup %927  ;;  %v1425_v6 = vmax.f32 %v249_v50, 0.0 }
  0xea   :  { %v234_v43 = vmul.f32 2.0, %v141_v37  ;;  %v611_v45 = vmul.f32 %v1341_v38, %v479_v28  ;;  %v315_v48 = vsel %vm314_vm7, %v1293_v7, %v313_v30  ;;  %v289_v32 = vmul.f32 %v288_v31, %v1303_v15 }
  0xeb   :  { %v245_v52 = vsub.f32 %v1309_v17, %v229_v35  ;;  %v755_v46 = vmul.f32 %v754_v39, %v1314_v20  ;;  %v318_v51 = vsel %vm316_vm9, %v317_v56, %v315_v48  ;;  %v297_v53 = vmul.f32 %v926_v22, %v296_v44  ;;  %v201_v35 = vpop.xlane.xlu2 %200 }
  0xec   :  { %v627_v57 = vmul.f32 %v611_v45, %v611_v45  ;;  %v466_v58 = vsub.f32 1.0, %v318_v51  ;;  %v291_v38 = vsel %vm290_vm11, %v1303_v15, %v289_v32  ;;  %v250_v0 = vsub.f32 %v1338_v34, %v234_v43 }
  0xed   :  { %v930_v60 = vpop.eup %929  ;;  %v1409_v17 = vmax.f32 %v245_v52, 0.0  ;;  %v757_v7 = vsel %vm756_vm8, %v1314_v20, %v755_v46  ;;  %v294_v56 = vsel %vm292_vm12, %v293_v4, %v291_v38  ;;  %v298_v63 = vmul.f32 0.5, %v297_v53  ;;  %v772_v53 = vld [vmem:[#allocation2] sm:$0x1] }
  0xee   :  { %643 = vadd.xlane.f32.xlu2 %v627_v57  ;;  %v1422_v1 = vsel %vm758_vm10, %v759_v61, %v757_v7  ;;  %v482_v2 = vmax.f32 %v466_v58, 0.0  ;;  %v464_v3 = vsub.f32 1.0, %v294_v56  ;;  %v322_v8 = vmul.f32 0.5, %v321_v40 }
  0xef   :  { %v773_v15 = vrot.slane %v1422_v1, 4  ;;  %v299_v4 = vsub.f32 1.5, %v298_v63  ;;  %931 = vrsqrt.f32 %v1409_v17  ;;  %v332_v20 = vmul.f32 %v930_v60, %v1379_v12 }
  0xf0   :  { %v129_v34 = vpop.f32.mrf.mxu2  ;;  %v614_v9 = vmul.f32 0.0, %v482_v2  ;;  %v480_v10 = vmax.f32 %v464_v3, 0.0  ;;  %v323_v19 = vsub.f32 1.5, %v322_v8  ;;  %v1432_v21 = vmax.f32 %v250_v0, 0.0 }
  0xf1   :  { %v774_v61 = vmin.f32 %v1422_v1, %v773_v15  ;;  %v230_v13 = vmul.f32 2.0, %v129_v34  ;;  %v144_v14 = vpop.f32.mrf.mxu3  ;;  %v300_v18 = vmul.f32 %v926_v22, %v299_v4  ;;  %v333_v50 = vmul.f32 %v930_v60, %v332_v20 }
  0xf2   :  { %v235_v23 = vmul.f32 2.0, %v144_v14  ;;  %v612_v26 = vmul.f32 0.0, %v480_v10  ;;  %v324_v31 = vmul.f32 %v1377_v11, %v323_v19  ;;  %v630_v39 = vmul.f32 %v614_v9, %v614_v9 }
  0xf3   :  { %v775_v27 = vrot.slane %v774_v61, 2  ;;  %v246_v28 = vsub.f32 %v1327_v29, %v230_v13  ;;  %v301_v30 = vmul.f32 %v300_v18, %v1350_v47  ;;  %v334_v40 = vmul.f32 0.5, %v333_v50 }
  0xf4   :  { %v251_v37 = vsub.f32 %v1354_v49, %v235_v23  ;;  %v628_v44 = vmul.f32 %v612_v26, %v612_v26  ;;  %v325_v48 = vmul.f32 %v324_v31, %v1343_v42  ;;  %933 = vrsqrt.f32 %v1425_v6 }
  0xf5   :  { %v776_v22 = vmin.f32 %v774_v61, %v775_v27  ;;  %v1438_v43 = vmax.f32 %v246_v28, 0.0  ;;  %v303_v45 = vsel %vm302_vm13, %v1350_v47, %v301_v30  ;;  %v1444_v29 = vpop.eup %931  ;;  %v1452_v11 = vadd.f32 %v1278_v41, %v201_v35 }
  0xf6   :  { %649 = vadd.xlane.f32.xlu2 %v630_v39  ;;  %645 = vadd.xlane.f32.xlu0 %v628_v44  ;;  %v306_v49 = vsel %vm304_vm14, %v305_v24, %v303_v45  ;;  %v335_v32 = vsub.f32 1.5, %v334_v40  ;;  %v327_v51 = vsel %vm326_vm15, %v1343_v42, %v325_v48  ;;  %v1459_v57 = vmax.f32 %v251_v37, 0.0 }
  0xf7   :  { %v777_v52 = vrot.slane %v776_v22, 1  ;;  %935 = vrsqrt.f32 %v1438_v43  ;;  %v465_v46 = vsub.f32 1.0, %v306_v49  ;;  %v330_v47 = vsel %vm328_vm0, %v329_v59, %v327_v51  ;;  %v203_v59 = vpop.xlane.xlu0 %202 }
  0xf8   :  { %937 = vrsqrt.f32 %v1432_v21  ;;  %v336_v24 = vmul.f32 %v930_v60, %v335_v32  ;;  %v467_v56 = vsub.f32 1.0, %v330_v47  ;;  %vm338_vm1 = vcmp.eq.f32.partialorder %v1379_v12, inf }
  0xf9   :  { %v778_v58 = vmin.f32 %v776_v22, %v777_v52  ;;  %v147_v38 = vpop.f32.mrf.mxu3  ;;  %v481_v7 = vmax.f32 %v465_v46, 0.0  ;;  %vm340_vm2 = vcmp.eq.f32.partialorder %v1379_v12, 0.0  ;;  %v344_v2 = vmul.f32 %v1444_v29, %v1409_v17 }
  0xfa   :  { %v236_v63 = vmul.f32 2.0, %v147_v38  ;;  %v337_v0 = vmul.f32 %v336_v24, %v1379_v12  ;;  %v483_v4 = vmax.f32 %v467_v56, 0.0  ;;  %v341_v42 = vand.u32 2147483648, %v1379_v12  ;;  %v1469_v60 = vpop.eup %933 }
  0xfb   :  { %v779_v3 = vmin.f32 %v772_v53, %v778_v58  ;;  %v613_v15 = vmul.f32 0.0, %v481_v7  ;;  %939 = vrsqrt.f32 %v1459_v57  ;;  %v345_v9 = vmul.f32 %v1444_v29, %v344_v2 }
  0xfc   :  { %v252_v8 = vsub.f32 %v1335_v33, %v236_v63  ;;  %v339_v34 = vsel %vm338_vm1, %v1379_v12, %v337_v0  ;;  %v615_v61 = vmul.f32 0.0, %v483_v4  ;;  %v368_v14 = vmul.f32 %v1371_v5, %v1322_v25 }
  0xfd   :  { %v936_v10 = vpop.eup %935  ;;  %780 = vst [vmem:[#allocation2] sm:$0x1] %v779_v3  ;;  %v629_v20 = vmul.f32 %v613_v15, %v613_v15  ;;  %v342_v13 = vsel %vm340_vm2, %v341_v42, %v339_v34  ;;  %v1482_v23 = vadd.f32 %v1278_v41, %v203_v59  ;;  %v346_v33 = vmul.f32 0.5, %v345_v9 }
  0xfe   :  { %v1479_v18 = vpop.eup %937  ;;  %v468_v19 = vsub.f32 1.0, %v342_v13  ;;  %v356_v26 = vmul.f32 %v936_v10, %v1438_v43  ;;  %v1485_v50 = vmax.f32 %v252_v8, 0.0  ;;  %v631_v27 = vmul.f32 %v615_v61, %v615_v61 }
  0xff   :  { %647 = vadd.xlane.f32.xlu1 %v629_v20  ;;  %vm350_vm4 = vcmp.eq.f32.partialorder %v1409_v17, inf  ;;  %v369_v12 = vmul.f32 %v1371_v5, %v368_v14  ;;  %v347_v30 = vsub.f32 1.5, %v346_v33  ;;  %vm352_vm5 = vcmp.eq.f32.partialorder %v1409_v17, 0.0 }
 0x100   :  { %v484_v28 = vmax.f32 %v468_v19, 0.0  ;;  %vm374_vm6 = vcmp.eq.f32.partialorder %v1322_v25, inf  ;;  %v357_v31 = vmul.f32 %v936_v10, %v356_v26  ;;  %651 = vadd.xlane.f32.xlu0 %v631_v27  ;;  %v353_v35 = vand.u32 2147483648, %v1409_v17 }
 0x101   :  { %v150_v41 = vpop.f32.mrf.mxu3  ;;  %v370_v37 = vmul.f32 0.5, %v369_v12  ;;  %vm376_vm7 = vcmp.eq.f32.partialorder %v1322_v25, 0.0  ;;  %vm362_vm8 = vcmp.eq.f32.partialorder %v1438_v43, inf  ;;  %v380_v39 = vmul.f32 %v1402_v55, %v1362_v62  ;;  %v1496_v44 = vpop.eup %939 }
 0x102   :  { %v237_v40 = vmul.f32 2.0, %v150_v41  ;;  %v616_v22 = vmul.f32 0.0, %v484_v28  ;;  %v348_v45 = vmul.f32 %v1444_v29, %v347_v30  ;;  %v358_v48 = vmul.f32 0.5, %v357_v31 }
 0x103   :  { %941 = vrsqrt.f32 %v1485_v50  ;;  %v371_v49 = vsub.f32 1.5, %v370_v37  ;;  %vm364_vm9 = vcmp.eq.f32.partialorder %v1438_v43, 0.0  ;;  %v381_v32 = vmul.f32 %v1402_v55, %v380_v39 }
 0x104   :  { %v253_v52 = vsub.f32 %v1452_v11, %v237_v40  ;;  %v349_v46 = vmul.f32 %v348_v45, %v1409_v17  ;;  %v359_v51 = vsub.f32 1.5, %v358_v48  ;;  %v365_v53 = vand.u32 2147483648, %v1438_v43 }
 0x105   :  { %v632_v47 = vmul.f32 %v616_v22, %v616_v22  ;;  %v372_v24 = vmul.f32 %v1371_v5, %v371_v49  ;;  %v382_v58 = vmul.f32 0.5, %v381_v32  ;;  %v404_v29 = vmul.f32 %v1479_v18, %v1432_v21 }
 0x106   :  { %v1508_v38 = vmax.f32 %v253_v52, 0.0  ;;  %v351_v7 = vsel %vm350_vm4, %v1409_v17, %v349_v46  ;;  %v360_v56 = vmul.f32 %v936_v10, %v359_v51  ;;  %vm386_vm10 = vcmp.eq.f32.partialorder %v1362_v62, inf }
 0x107   :  { %653 = vadd.xlane.f32.xlu1 %v632_v47  ;;  %v354_v11 = vsel %vm352_vm5, %v353_v35, %v351_v7  ;;  %v373_v63 = vmul.f32 %v372_v24, %v1322_v25  ;;  %v383_v5 = vsub.f32 1.5, %v382_v58  ;;  %v405_v0 = vmul.f32 %v1479_v18, %v404_v29 }
 0x108   :  { %943 = vrsqrt.f32 %v1508_v38  ;;  %v469_v2 = vsub.f32 1.0, %v354_v11  ;;  %v361_v3 = vmul.f32 %v360_v56, %v1438_v43  ;;  %v389_v15 = vand.u32 2147483648, %v1362_v62 }
 0x109   :  { %v1521_v4 = vpop.eup %941  ;;  %v153_v42 = vpop.f32.mrf.mxu3  ;;  %v375_v17 = vsel %vm374_vm6, %v1322_v25, %v373_v63  ;;  %v384_v59 = vmul.f32 %v1402_v55, %v383_v5  ;;  %v406_v8 = vmul.f32 0.5, %v405_v0  ;;  %v392_v34 = vmul.f32 %v1469_v60, %v1425_v6 }
 0x10a   :  { %v238_v9 = vmul.f32 2.0, %v153_v42  ;;  %v485_v10 = vmax.f32 %v469_v2, 0.0  ;;  %v378_v20 = vsel %vm376_vm7, %v377_v16, %v375_v17  ;;  %v363_v61 = vsel %vm362_vm8, %v1438_v43, %v361_v3 }
 0x10b   :  { %v471_v13 = vsub.f32 1.0, %v378_v20  ;;  %v366_v14 = vsel %vm364_vm9, %v365_v53, %v363_v61  ;;  %v385_v55 = vmul.f32 %v384_v59, %v1362_v62  ;;  %v407_v19 = vsub.f32 1.5, %v406_v8 }
 0x10c   :  { %v254_v33 = vsub.f32 %v1482_v23, %v238_v9  ;;  %v617_v26 = vmul.f32 0.0, %v485_v10  ;;  %v470_v27 = vsub.f32 1.0, %v366_v14  ;;  %v393_v12 = vmul.f32 %v1469_v60, %v392_v34 }
 0x10d   :  { %v487_v28 = vmax.f32 %v471_v13, 0.0  ;;  %v387_v25 = vsel %vm386_vm10, %v1362_v62, %v385_v55  ;;  %vm388_vm11 = vcmp.eq.f32.partialorder %v1362_v62, 0.0  ;;  %v408_v16 = vmul.f32 %v1479_v18, %v407_v19 }
 0x10e   :  { %v944_v43 = vpop.eup %943  ;;  %v1546_v30 = vmax.f32 %v254_v33, 0.0  ;;  %v633_v31 = vmul.f32 %v617_v26, %v617_v26  ;;  %v486_v41 = vmax.f32 %v470_v27, 0.0  ;;  %v390_v35 = vsel %vm388_vm11, %v389_v15, %v387_v25 }
 0x10f   :  { %v619_v23 = vmul.f32 0.0, %v487_v28  ;;  %v472_v37 = vsub.f32 1.0, %v390_v35  ;;  %v409_v39 = vmul.f32 %v408_v16, %v1432_v21  ;;  %v394_v40 = vmul.f32 0.5, %v393_v12 }
 0x110   :  { %655 = vadd.xlane.f32.xlu2 %v633_v31  ;;  %v618_v22 = vmul.f32 0.0, %v486_v41  ;;  %vm410_vm12 = vcmp.eq.f32.partialorder %v1432_v21, inf  ;;  %vm412_vm13 = vcmp.eq.f32.partialorder %v1432_v21, 0.0  ;;  %v413_v62 = vand.u32 2147483648, %v1432_v21 }
 0x111   :  { %v635_v18 = vmul.f32 %v619_v23, %v619_v23  ;;  %v488_v45 = vmax.f32 %v472_v37, 0.0  ;;  %v411_v48 = vsel %vm410_vm12, %v1432_v21, %v409_v39  ;;  %v395_v49 = vsub.f32 1.5, %v394_v40 }
 0x112   :  { %945 = vrsqrt.f32 %v1546_v30  ;;  %v634_v32 = vmul.f32 %v618_v22, %v618_v22  ;;  %v414_v52 = vsel %vm412_vm13, %v413_v62, %v411_v48  ;;  %v416_v46 = vmul.f32 %v1496_v44, %v1459_v57 }
 0x113   :  { %659 = vadd.xlane.f32.xlu1 %v635_v18  ;;  %v620_v51 = vmul.f32 0.0, %v488_v45  ;;  %v474_v53 = vsub.f32 1.0, %v414_v52  ;;  %v396_v47 = vmul.f32 %v1469_v60, %v395_v49  ;;  %v440_v58 = vmul.f32 %v944_v43, %v1508_v38 }
 0x114   :  { %657 = vadd.xlane.f32.xlu0 %v634_v32  ;;  %v417_v24 = vmul.f32 %v1496_v44, %v416_v46  ;;  %vm398_vm14 = vcmp.eq.f32.partialorder %v1425_v6, inf  ;;  %v401_v7 = vand.u32 2147483648, %v1425_v6  ;;  %v428_v5 = vmul.f32 %v1521_v4, %v1485_v50 }
 0x115   :  { %v490_v29 = vmax.f32 %v474_v53, 0.0  ;;  %v397_v21 = vmul.f32 %v396_v47, %v1425_v6  ;;  %v636_v56 = vmul.f32 %v620_v51, %v620_v51  ;;  %v441_v63 = vmul.f32 %v944_v43, %v440_v58 }
 0x116   :  { %v418_v11 = vmul.f32 0.5, %v417_v24  ;;  %vm400_vm15 = vcmp.eq.f32.partialorder %v1425_v6, 0.0  ;;  %v429_v17 = vmul.f32 %v1521_v4, %v428_v5  ;;  %vm422_vm0 = vcmp.eq.f32.partialorder %v1459_v57, inf }
 0x117   :  { %v622_v0 = vmul.f32 0.0, %v490_v29  ;;  %v399_v60 = vsel %vm398_vm14, %v1425_v6, %v397_v21  ;;  %v442_v42 = vmul.f32 0.5, %v441_v63  ;;  %vm424_vm1 = vcmp.eq.f32.partialorder %v1459_v57, 0.0 }
 0x118   :  { %v946_v2 = vpop.eup %945  ;;  %661 = vadd.xlane.f32.xlu2 %v636_v56  ;;  %v402_v3 = vsel %vm400_vm15, %v401_v7, %v399_v60  ;;  %v419_v15 = vsub.f32 1.5, %v418_v11  ;;  %v430_v10 = vmul.f32 0.5, %v429_v17  ;;  %v425_v6 = vand.u32 2147483648, %v1459_v57  ;;  %v797_v7 = vld [vmem:[#allocation2] sm:$0x1] }
 0x119   :  { %v638_v59 = vmul.f32 %v622_v0, %v622_v0  ;;  %v473_v8 = vsub.f32 1.0, %v402_v3  ;;  %v443_v9 = vsub.f32 1.5, %v442_v42  ;;  %v452_v61 = vmul.f32 %v946_v2, %v1546_v30 }
 0x11a   :  { %v420_v34 = vmul.f32 %v1496_v44, %v419_v15  ;;  %vm446_vm2 = vcmp.eq.f32.partialorder %v1508_v38, inf  ;;  %v431_v55 = vsub.f32 1.5, %v430_v10  ;;  %vm448_vm4 = vcmp.eq.f32.partialorder %v1508_v38, 0.0 }
 0x11b   :  { %665 = vadd.xlane.f32.xlu1 %v638_v59  ;;  %v489_v20 = vmax.f32 %v473_v8, 0.0  ;;  %v444_v14 = vmul.f32 %v944_v43, %v443_v9  ;;  %v453_v44 = vmul.f32 %v946_v2, %v452_v61  ;;  %v761_v33 = vsub.f32 0.0, %v1422_v1 }
 0x11c   :  { %v421_v13 = vmul.f32 %v420_v34, %v1459_v57  ;;  %v449_v12 = vand.u32 2147483648, %v1508_v38  ;;  %v432_v28 = vmul.f32 %v1521_v4, %v431_v55  ;;  %vm434_vm5 = vcmp.eq.f32.partialorder %v1485_v50, inf }
 0x11d   :  { %v621_v19 = vmul.f32 0.0, %v489_v20  ;;  %v445_v27 = vmul.f32 %v444_v14, %v1508_v38  ;;  %v454_v43 = vmul.f32 0.5, %v453_v44  ;;  %v762_v31 = vmul.f32 1.442695, %v761_v33 }
 0x11e   :  { %v423_v26 = vsel %vm422_vm0, %v1459_v57, %v421_v13  ;;  %v433_v23 = vmul.f32 %v432_v28, %v1485_v50  ;;  %v437_v39 = vand.u32 2147483648, %v1485_v50  ;;  %vm436_vm6 = vcmp.eq.f32.partialorder %v1485_v50, 0.0 }
 0x11f   :  { %v637_v25 = vmul.f32 %v621_v19, %v621_v19  ;;  %v426_v16 = vsel %vm424_vm1, %v425_v6, %v423_v26  ;;  %v447_v35 = vsel %vm446_vm2, %v1508_v38, %v445_v27  ;;  %v455_v4 = vsub.f32 1.5, %v454_v43 }
 0x120   :  { %v475_v41 = vsub.f32 1.0, %v426_v16  ;;  %v450_v37 = vsel %vm448_vm4, %v449_v12, %v447_v35  ;;  %947 = vpow2.f32 %v762_v31  ;;  %v435_v22 = vsel %vm434_vm5, %v1485_v50, %v433_v23 }
 0x121   :  { %663 = vadd.xlane.f32.xlu0 %v637_v25  ;;  %v477_v57 = vsub.f32 1.0, %v450_v37  ;;  %v438_v62 = vsel %vm436_vm6, %v437_v39, %v435_v22  ;;  %v456_v18 = vmul.f32 %v946_v2, %v455_v4  ;;  %vm458_vm7 = vcmp.eq.f32.partialorder %v1546_v30, inf }
 0x122   :  { %v491_v40 = vmax.f32 %v475_v41, 0.0  ;;  %v476_v49 = vsub.f32 1.0, %v438_v62  ;;  %v461_v51 = vand.u32 2147483648, %v1546_v30  ;;  %vm460_vm8 = vcmp.eq.f32.partialorder %v1546_v30, 0.0 }
 0x123   :  { %v493_v48 = vmax.f32 %v477_v57, 0.0  ;;  %v457_v32 = vmul.f32 %v456_v18, %v1546_v30  ;;  %v798_v63 = vsel %vm562_vm3, %v797_v7, 0.0  ;;  %vm799_vm9 = vcmask 1040384  }
 0x124   :  { %v623_v45 = vmul.f32 0.0, %v491_v40  ;;  %v492_v46 = vmax.f32 %v476_v49, 0.0  ;;  %v800_v0 = vsel %vm799_vm9, %v798_v63, 0.0  ;;  %vm73_vm3 = vcmask 0  }
 0x125   :  { %v625_v52 = vmul.f32 0.0, %v493_v48  ;;  %v459_v47 = vsel %vm458_vm7, %v1546_v30, %v457_v32  ;;  %74 = vst.msk [vmem:[#allocation12] sm:$0x1] %vm73_vm3, %v1108_v36 }
 0x126   :  { %v639_v38 = vmul.f32 %v623_v45, %v623_v45  ;;  %v948_v53 = vpop.eup %947  ;;  %v624_v24 = vmul.f32 0.0, %v492_v46  ;;  %v462_v58 = vsel %vm460_vm8, %v461_v51, %v459_v47 }
 0x127   :  { %v641_v50 = vmul.f32 %v625_v52, %v625_v52  ;;  %764 = vst [vmem:[#allocation8] sm:$0xff] %v948_v53  ;;  %v478_v29 = vsub.f32 1.0, %v462_v58 }
 0x128   :  { %667 = vadd.xlane.f32.xlu2 %v639_v38  ;;  %v640_v21 = vmul.f32 %v624_v24, %v624_v24  ;;  %814 = dma.vmem_to_hbm [thread:$0]  %s810_s9, 128, %s812_s12, [#allocation5]  }
 0x129   :  { %671 = vadd.xlane.f32.xlu1 %v641_v50  ;;  %v494_v56 = vmax.f32 %v478_v29, 0.0 }
 0x12a   :  { %669 = vadd.xlane.f32.xlu0 %v640_v21 }
 0x12b   :  { %v626_v11 = vmul.f32 0.0, %v494_v56 }
 0x12c   :  { %v782_v48 = vld [vmem:[#allocation12] sm:$0x1] }
 0x12d   :  { %v642_v5 = vmul.f32 %v626_v11, %v626_v11 }
 0x130   :  { %673 = vadd.xlane.f32.xlu2 %v642_v5 }
 0x131   :  { %801 = vadd.xlane.f32.xlu1 %v800_v0 }
 0x132   :  { %783 = vmin.xlane.f32.xlu0 %v1422_v1 }
 0x161   :  { %v644_v30 = vpop.xlane.xlu2 %643 }
 0x169   :  { %v646_v60 = vpop.xlane.xlu0 %645  ;;  %v650_v15 = vpop.xlane.xlu2 %649 }
 0x16a   :  { %v675_v2 = vadd.f32 %v646_v60, %v644_v30 }
 0x172   :  { %v648_v54 = vpop.xlane.xlu1 %647 }
 0x173   :  { %v676_v3 = vadd.f32 %v675_v2, %v648_v54  ;;  %v652_v42 = vpop.xlane.xlu0 %651 }
 0x175   :  { %v677_v1 = vadd.f32 %v676_v3, %v650_v15 }
 0x177   :  { %v678_v59 = vadd.f32 %v677_v1, %v652_v42 }
 0x17a   :  { %v654_v17 = vpop.xlane.xlu1 %653 }
 0x17b   :  { %v679_v34 = vadd.f32 %v678_v59, %v654_v17 }
 0x183   :  { %v656_v8 = vpop.xlane.xlu2 %655 }
 0x184   :  { %v680_v10 = vadd.f32 %v679_v34, %v656_v8 }
 0x186   :  { %v660_v20 = vpop.xlane.xlu1 %659 }
 0x187   :  { %v658_v9 = vpop.xlane.xlu0 %657 }
 0x188   :  { %v681_v6 = vadd.f32 %v680_v10, %v658_v9 }
 0x18a   :  { %v682_v61 = vadd.f32 %v681_v6, %v660_v20 }
 0x18b   :  { %v662_v13 = vpop.xlane.xlu2 %661 }
 0x18c   :  { %v683_v14 = vadd.f32 %v682_v61, %v662_v13 }
 0x18e   :  { %v666_v19 = vpop.xlane.xlu1 %665 }
 0x194   :  { %v664_v55 = vpop.xlane.xlu0 %663 }
 0x195   :  { %v684_v44 = vadd.f32 %v683_v14, %v664_v55 }
 0x197   :  { %v685_v33 = vadd.f32 %v684_v44, %v666_v19 }
 0x19b   :  { %v668_v26 = vpop.xlane.xlu2 %667 }
 0x19c   :  { %v672_v27 = vpop.xlane.xlu1 %671  ;;  %v686_v12 = vadd.f32 %v685_v33, %v668_v26 }
 0x19d   :  { %v670_v28 = vpop.xlane.xlu0 %669 }
 0x19e   :  { %v687_v36 = vadd.f32 %v686_v12, %v670_v28 }
 0x1a0   :  { %v688_v25 = vadd.f32 %v687_v36, %v672_v27 }
 0x1a3   :  { %v674_v16 = vpop.xlane.xlu2 %673 }
 0x1a4   :  { %v802_v43 = vpop.xlane.xlu1 %801  ;;  %v689_v31 = vadd.f32 %v688_v25, %v674_v16 }
 0x1a5   :  { %803 = vst.msk [vmem:[#allocation11] sm:$0x1] %vm73_vm3, %v802_v43  ;;  %v784_v35 = vpop.xlane.xlu0 %783 }
 0x1a6   :  { %v690_v41 = vrot.slane %v689_v31, 4  ;;  %v785_v23 = vrot.slane %v784_v35, 4 }
 0x1a8   :  { %v691_v37 = vadd.f32 %v690_v41, %v689_v31  ;;  %v786_v39 = vadd.f32 %v785_v23, %v784_v35 }
 0x1aa   :  { %v692_v4 = vrot.slane %v691_v37, 2  ;;  %v787_v40 = vrot.slane %v786_v39, 2 }
 0x1ac   :  { %v693_v57 = vadd.f32 %v692_v4, %v691_v37  ;;  %v788_v22 = vadd.f32 %v787_v40, %v786_v39 }
 0x1ae   :  { %v694_v62 = vrot.slane %v693_v57, 1  ;;  %v789_v18 = vrot.slane %v788_v22, 1 }
 0x1b0   :  { %v695_v45 = vadd.f32 %v694_v62, %v693_v57  ;;  %v790_v49 = vadd.f32 %v789_v18, %v788_v22 }
 0x1b2   :  { %v696_v32 = vmul.f32 0.5, %v695_v45  ;;  %v791_v38 = vadd.f32 %v790_v49, %v782_v48 }
 0x1b4   :  { %697 = vst.msk [vmem:[#allocation9] sm:$0x1] %vm73_vm3, %v696_v32 }
 0x1b5   :  { %825 = dma.vmem_to_hbm [thread:$0]  %s821_s13, 16, %s823_s16, [#allocation10]   ;;  %793 = vst.msk [vmem:[#allocation12] sm:$0x1] %vm73_vm3, %v791_v38 }
 0x1b6   :  { %836 = dma.vmem_to_hbm [thread:$0]  %s832_s18, 16, %s834_s21, [#allocation10]  }
 0x1b7   :  { %847 = dma.vmem_to_hbm [thread:$0]  %s843_s23, 16, %s845_s26, [#allocation13]  }
 0x1b8   :  { %1097 = dma.done.wait [#allocation5], 128  }
 0x1b9   :  { %1098 = vsyncadd [#allocation5], 4294967168 }
 0x1ba   :  { %1099 = dma.done.wait [#allocation10], 32  }
 0x1bb   :  { %1100 = vsyncadd [#allocation10], 4294967264 }
 0x1bc   :  { %1101 = dma.done.wait [#allocation13], 16  }
 0x1bd   :  { %1102 = vsyncadd [#allocation13], 4294967280 }
 0x1be   :  { %864 = vsyncpa [#allocation4], 1 }
 0x1bf   :  { %865 = vsyncpa [#allocation7], 1 }
 0x1c0   :  { %866 = vsyncpa [#allocation5], 1 }
 0x1c1   :  { %867 = vsyncpa [#allocation10], 1 }
 0x1c2   :  { %868 = vsyncpa [#allocation13], 1 }

</bundles_post_ra>
